<compile_context>
chip_gen: v7x
topology: tpu7x:2x2x1
jax: 0.10.0
libtpu: 0.0.40
codegen_flags: <defaults>
</compile_context>

<pallas_src>
import jax
import jax.numpy as jnp
import numpy as np
from jax.experimental import pallas as pl
from jax.experimental.pallas import tpu as pltpu

BN_EPS = 1e-5
_VMEM_LIMIT = 32 * 1024 * 1024       # explicit scoped-VMEM limit; safe on v5e/v6e/v7x
_VMEM_BUDGET = 16 * 1024 * 1024      # target working set for the tile picker


def _mlp_head_kernel(x_ref, w1_ref, b1_ref, w2_ref, b2_ref, o_ref):
    # x_ref : (tile_n, in)        w1_ref: (in, hidden)   b1_ref: (1, hidden) f32 (BN folded)
    # w2_ref: (hidden, out)       b2_ref: (1, out) f32   o_ref : (tile_n, out)
    h = jnp.dot(x_ref[...], w1_ref[...], preferred_element_type=jnp.float32)
    h = jnp.maximum(h + b1_ref[...], 0.0)        # bias (+ folded BN) + ReLU
    h = h.astype(w2_ref.dtype)                   # MXU-native operand dtype for 2nd matmul
    o = jnp.dot(h, w2_ref[...], preferred_element_type=jnp.float32) + b2_ref[...]
    o_ref[...] = o.astype(o_ref.dtype)


def _pick_tile_n(N, in_feats, hidden, out_feats, itemsize):
    """Largest N-tile (<= 512 rows) whose double-buffered working set fits the budget."""
    if N <= 512:
        return N                                  # block == full dim is always legal

    def need(t):
        return (2 * t * in_feats * itemsize                       # x   (double-buffered)
                + 2 * t * out_feats * itemsize                    # out (double-buffered)
                + 2 * (in_feats * hidden + hidden * out_feats) * itemsize  # weights x2
                + 2 * (hidden + out_feats) * 4                    # biases x2 (f32)
                + t * hidden * 4 + t * out_feats * 4)             # f32 intermediates

    tn = 512
    while tn > 8 and need(tn) > _VMEM_BUDGET:
        tn //= 2
    return max(tn, 8)


def multi_head_mlp_pallas(x, params, concat=False):
    """x: (N, in_feats) shared across heads, or (N, n_heads, in_feats) per-head input.
    Returns (N, n_heads, out_feats), or (N, n_heads*out_feats) if concat=True."""
    W1, b1, gamma, beta, W2, b2 = params
    n_heads, in_feats, hidden = W1.shape
    out_feats = W2.shape[-1]
    N = x.shape[0]

    # Fold eval-mode BatchNorm (running mean=0, var=1) into the first linear layer:
    #   y = (x@W1 + b1) * gamma/sqrt(1+eps) + beta  ==  x@W1' + b1'
    scale = gamma.astype(jnp.float32) * (1.0 / np.sqrt(1.0 + BN_EPS))    # (H, 1, hidden)
    W1f = (W1.astype(jnp.float32) * scale).astype(W1.dtype)              # (H, in, hidden)
    b1f = b1.astype(jnp.float32) * scale + beta.astype(jnp.float32)      # (H, 1, hidden) f32
    b2f = b2.astype(jnp.float32)                                         # (H, 1, out)   f32

    tn = _pick_tile_n(N, in_feats, hidden, out_feats, jnp.dtype(x.dtype).itemsize)
    grid = (n_heads, pl.cdiv(N, tn))             # heads outer, N-tiles inner

    if x.ndim == 3:
        # (N, n_heads, in) -> head-major (n_heads, N, in) for clean (tn, in_feats) blocks.
        x_in = jnp.transpose(x, (1, 0, 2))
        x_spec = pl.BlockSpec((None, tn, in_feats), lambda h, i: (h, i, 0))
    else:
        # Shared input: every head re-reads the same HBM array (no broadcast copy in HBM).
        x_in = x
        x_spec = pl.BlockSpec((tn, in_feats), lambda h, i: (i, 0))

    out_heads = pl.pallas_call(
        _mlp_head_kernel,
        out_shape=jax.ShapeDtypeStruct((n_heads, N, out_feats), x.dtype),
        grid_spec=pltpu.PrefetchScalarGridSpec(
            num_scalar_prefetch=0,
            grid=grid,
            in_specs=[
                x_spec,
                # weight/bias index_maps depend only on h -> stay resident across N tiles
                pl.BlockSpec((None, in_feats, hidden), lambda h, i: (h, 0, 0)),
                pl.BlockSpec((None, 1, hidden), lambda h, i: (h, 0, 0)),
                pl.BlockSpec((None, hidden, out_feats), lambda h, i: (h, 0, 0)),
                pl.BlockSpec((None, 1, out_feats), lambda h, i: (h, 0, 0)),
            ],
            out_specs=pl.BlockSpec((None, tn, out_feats), lambda h, i: (h, i, 0)),
        ),
        compiler_params=pltpu.CompilerParams(
            dimension_semantics=("parallel", "parallel"),
            vmem_limit_bytes=_VMEM_LIMIT),
    )(x_in, W1f, b1f, W2, b2f)

    out = jnp.transpose(out_heads, (1, 0, 2))    # (N, n_heads, out_feats)
    if concat:
        out = out.reshape(N, n_heads * out_feats)
    return out


def init_params(key, n_heads, in_feats, hidden, out_feats, dtype=jnp.float32):
    """Xavier-uniform(gain=sqrt(2)) weights, zero biases; BN gamma=1, beta=0."""
    gain = float(np.sqrt(2.0))  # calculate_gain('relu')
    k1, k2 = jax.random.split(key)

    def xavier(k, shape, fan_in, fan_out):
        bound = gain * np.sqrt(6.0 / (fan_in + fan_out))
        return jax.random.uniform(k, shape, dtype, minval=-bound, maxval=bound)

    # stored transposed relative to torch Linear.weight: (in, out)
    W1 = xavier(k1, (n_heads, in_feats, hidden), in_feats, hidden)
    W2 = xavier(k2, (n_heads, hidden, out_feats), hidden, out_feats)
    b1 = jnp.zeros((n_heads, 1, hidden), dtype)
    b2 = jnp.zeros((n_heads, 1, out_feats), dtype)
    gamma = jnp.ones((n_heads, 1, hidden), dtype)
    beta = jnp.zeros((n_heads, 1, hidden), dtype)
    return W1, b1, gamma, beta, W2, b2


def reference(x, params, concat=False):
    """Pure-JAX reference with identical eval-mode semantics (BN NOT folded)."""
    W1, b1, gamma, beta, W2, b2 = params
    n_heads = W1.shape[0]
    outs = []
    for i in range(n_heads):
        xi = x[:, i, :] if x.ndim == 3 else x
        h = xi @ W1[i] + b1[i]
        h = h / jnp.sqrt(1.0 + BN_EPS) * gamma[i] + beta[i]
        h = jnp.maximum(h, 0.0)
        outs.append(h @ W2[i] + b2[i])
    out = jnp.stack(outs, axis=1)
    if concat:
        out = out.reshape(out.shape[0], -1)
    return out


if __name__ == "__main__":
    key = jax.random.PRNGKey(0)
    N, n_heads, in_feats, hidden, out_feats = 8, 4, 16, 32, 8
    kx, kp = jax.random.split(key)
    params = init_params(kp, n_heads, in_feats, hidden, out_feats)

    # 3-D per-head input path: (N, n_heads, in_feats)
    x3 = jax.random.normal(kx, (N, n_heads, in_feats), jnp.float32)
    out3 = jax.block_until_ready(multi_head_mlp_pallas(x3, params, concat=False))
    np.testing.assert_allclose(np.asarray(out3), np.asarray(reference(x3, params)),
                               rtol=3e-5, atol=3e-5)
    assert out3.shape == (N, n_heads, out_feats)

    # 2-D shared-input path (no HBM broadcast), concat=True
    x2 = x3[:, 0, :]
    out2 = jax.block_until_ready(multi_head_mlp_pallas(x2, params, concat=True))
    np.testing.assert_allclose(np.asarray(out2),
                               np.asarray(reference(x2, params, concat=True)),
                               rtol=3e-5, atol=3e-5)
    assert out2.shape == (N, n_heads * out_feats)

    print("KERNEL_OK")
</pallas_src>

<mosaic_0001>
module attributes {stable_mosaic.version = 11 : i64} {
  func.func @_mlp_head_kernel(%arg0: i32, %arg1: i32, %arg2: memref<1x8x16xf32, #tpu.memory_space<vmem>>, %arg3: memref<1x16x32xf32, #tpu.memory_space<vmem>>, %arg4: memref<1x1x32xf32, #tpu.memory_space<vmem>>, %arg5: memref<1x32x8xf32, #tpu.memory_space<vmem>>, %arg6: memref<1x1x8xf32, #tpu.memory_space<vmem>>, %arg7: memref<1x8x8xf32, #tpu.memory_space<vmem>>) attributes {dimension_semantics = [#tpu.dimension_semantics<parallel>, #tpu.dimension_semantics<parallel>], iteration_bounds = array<i64: 4, 1>, scalar_prefetch = 0 : i64, scratch_operands = 0 : i64, tpu.core_type = #tpu.core_type<tc>, window_params = [{transform_indices = @transform_0, window_bounds = array<i64: 1, 8, 16>}, {transform_indices = @transform_1, window_bounds = array<i64: 1, 16, 32>}, {transform_indices = @transform_2, window_bounds = array<i64: 1, 1, 32>}, {transform_indices = @transform_3, window_bounds = array<i64: 1, 32, 8>}, {transform_indices = @transform_4, window_bounds = array<i64: 1, 1, 8>}, {transform_indices = @transform_5, window_bounds = array<i64: 1, 8, 8>}]} {
    %c0 = arith.constant 0 : index
    %c0_0 = arith.constant 0 : index
    %c0_1 = arith.constant 0 : index
    %0 = vector.load %arg2[%c0, %c0_0, %c0_1] : memref<1x8x16xf32, #tpu.memory_space<vmem>>, vector<1x8x16xf32>
    %1 = vector.shape_cast %0 : vector<1x8x16xf32> to vector<8x16xf32>
    %c0_2 = arith.constant 0 : index
    %c0_3 = arith.constant 0 : index
    %c0_4 = arith.constant 0 : index
    %2 = vector.load %arg3[%c0_2, %c0_3, %c0_4] : memref<1x16x32xf32, #tpu.memory_space<vmem>>, vector<1x16x32xf32>
    %3 = vector.shape_cast %2 : vector<1x16x32xf32> to vector<16x32xf32>
    %cst = arith.constant dense<0.000000e+00> : vector<8x32xf32>
    %4 = tpu.matmul %1, %3, %cst {dimension_numbers = #tpu.dot_dimension_numbers<[1], [0], [0], [1], [0, 0, 1, 1], [], []>} : vector<8x16xf32>, vector<16x32xf32>, vector<8x32xf32> -> vector<8x32xf32>
    %c0_5 = arith.constant 0 : index
    %c0_6 = arith.constant 0 : index
    %c0_7 = arith.constant 0 : index
    %5 = vector.load %arg4[%c0_5, %c0_6, %c0_7] : memref<1x1x32xf32, #tpu.memory_space<vmem>>, vector<1x1x32xf32>
    %6 = vector.shape_cast %5 : vector<1x1x32xf32> to vector<1x32xf32>
    %7 = vector.broadcast %6 : vector<1x32xf32> to vector<8x32xf32>
    %8 = arith.addf %4, %7 : vector<8x32xf32>
    %cst_8 = arith.constant 0.000000e+00 : f32
    %9 = vector.broadcast %cst_8 : f32 to vector<8x32xf32>
    %10 = arith.maximumf %8, %9 : vector<8x32xf32>
    %c0_9 = arith.constant 0 : index
    %c0_10 = arith.constant 0 : index
    %c0_11 = arith.constant 0 : index
    %11 = vector.load %arg5[%c0_9, %c0_10, %c0_11] : memref<1x32x8xf32, #tpu.memory_space<vmem>>, vector<1x32x8xf32>
    %12 = vector.shape_cast %11 : vector<1x32x8xf32> to vector<32x8xf32>
    %cst_12 = arith.constant dense<0.000000e+00> : vector<8x8xf32>
    %13 = tpu.matmul %10, %12, %cst_12 {dimension_numbers = #tpu.dot_dimension_numbers<[1], [0], [0], [1], [0, 0, 1, 1], [], []>} : vector<8x32xf32>, vector<32x8xf32>, vector<8x8xf32> -> vector<8x8xf32>
    %c0_13 = arith.constant 0 : index
    %c0_14 = arith.constant 0 : index
    %c0_15 = arith.constant 0 : index
    %14 = vector.load %arg6[%c0_13, %c0_14, %c0_15] : memref<1x1x8xf32, #tpu.memory_space<vmem>>, vector<1x1x8xf32>
    %15 = vector.shape_cast %14 : vector<1x1x8xf32> to vector<1x8xf32>
    %16 = vector.broadcast %15 : vector<1x8xf32> to vector<8x8xf32>
    %17 = arith.addf %13, %16 : vector<8x8xf32>
    %c0_16 = arith.constant 0 : index
    %c0_17 = arith.constant 0 : index
    %c0_18 = arith.constant 0 : index
    %18 = vector.load %arg7[%c0_16, %c0_17, %c0_18] : memref<1x8x8xf32, #tpu.memory_space<vmem>>, vector<1x8x8xf32>
    %19 = vector.shape_cast %18 : vector<1x8x8xf32> to vector<8x8xf32>
    %20 = vector.shape_cast %17 : vector<8x8xf32> to vector<1x8x8xf32>
    tpu.vector_store %arg7[%c0_16, %c0_17, %c0_18], %20 {strides = array<i32>} : memref<1x8x8xf32, #tpu.memory_space<vmem>>, vector<1x8x8xf32>,
    return
  }
  func.func @transform_0(%arg0: i32, %arg1: i32) -> (i32, i32, i32) {
    %c0_i32 = arith.constant 0 : i32
    %c0_i32_0 = arith.constant 0 : i32
    return %arg0, %arg1, %c0_i32 : i32, i32, i32
  }
  func.func @transform_1(%arg0: i32, %arg1: i32) -> (i32, i32, i32) {
    %c0_i32 = arith.constant 0 : i32
    %c0_i32_0 = arith.constant 0 : i32
    %c0_i32_1 = arith.constant 0 : i32
    return %arg0, %c0_i32, %c0_i32_0 : i32, i32, i32
  }
  func.func @transform_2(%arg0: i32, %arg1: i32) -> (i32, i32, i32) {
    %c0_i32 = arith.constant 0 : i32
    %c0_i32_0 = arith.constant 0 : i32
    %c0_i32_1 = arith.constant 0 : i32
    return %arg0, %c0_i32, %c0_i32_0 : i32, i32, i32
  }
  func.func @transform_3(%arg0: i32, %arg1: i32) -> (i32, i32, i32) {
    %c0_i32 = arith.constant 0 : i32
    %c0_i32_0 = arith.constant 0 : i32
    %c0_i32_1 = arith.constant 0 : i32
    return %arg0, %c0_i32, %c0_i32_0 : i32, i32, i32
  }
  func.func @transform_4(%arg0: i32, %arg1: i32) -> (i32, i32, i32) {
    %c0_i32 = arith.constant 0 : i32
    %c0_i32_0 = arith.constant 0 : i32
    %c0_i32_1 = arith.constant 0 : i32
    return %arg0, %c0_i32, %c0_i32_0 : i32, i32, i32
  }
  func.func @transform_5(%arg0: i32, %arg1: i32) -> (i32, i32, i32) {
    %c0_i32 = arith.constant 0 : i32
    %c0_i32_0 = arith.constant 0 : i32
    return %arg0, %arg1, %c0_i32 : i32, i32, i32
  }
}

</mosaic_0001>

<bundles_post_ra>
// kernel: tpu_custom_call.1
= control target key start
LH: loop header
LB: loop body
LE: loop exit
PB: predicated region body
PF: predicated region fallthrough
CT: control target
= control target key end

     0   :  { %10 = vsyncpa [#allocation3], 0  ;;  %s972_s0 = inlined_call_operand.vmem [shape: f32[4,8,16], index: 0, kind: input, shape index: {}]   ;;  %s973_s1 = inlined_call_operand.vmem [shape: f32[4,16,32], index: 1, kind: input, shape index: {}]   ;;  %s974_s2 = inlined_call_operand.vmem [shape: f32[4,1,32], index: 2, kind: input, shape index: {}]   ;;  %s975_s3 = inlined_call_operand.vmem [shape: f32[4,32,8], index: 3, kind: input, shape index: {}]   ;;  %s976_s4 = inlined_call_operand.vmem [shape: f32[4,1,8], index: 4, kind: input, shape index: {}]   ;;  %s977_s5 = inlined_call_operand.hbm [shape: f32[4,8,8], index: 5, kind: output, shape index: {}]  }
   0x1   :  { %12 = vsyncpa [#allocation3 + $0x1], 0  ;;  %s841_s18 = smov 0   ;;  %s843_s19 = smov 0  }
   0x2   :  { %s845_s20 = smov 0   ;;  %s847_s21 = smov 0  }
   0x3   :  { %s849_s22 = smov 0   ;;  %s851_s23 = smov 0  }
   0x4 LB: > { %s613_s24 = sadd.s32 4294967295, %s805_s23   ;;  %s614_s25 = sadd.s32 4294967294, %s805_s23   ;;  %s805_s23 = sphi %s851_s23, %s18_s23   ;;  %s801_s22 = sphi %s849_s22, %s984_s22   ;;  %s797_s21 = sphi %s847_s21, %s983_s21   ;;  %s793_s20 = sphi %s845_s20, %s982_s20   ;;  %s789_s19 = sphi %s843_s19, %s981_s19   ;;  %s785_s18 = sphi %s841_s18, %s980_s18  }
   0x5   : > { %s30_s26 = sadd.s32 1, %s801_s22  ;;  %s171_s27 = sadd.s32 1, %s793_s20 }
   0x6   : > { %p32_p0 = scmp.ge.s32.totalorder %s30_s26, 4  ;;  %p181_p1 = scmp.ne.s32.totalorder %s793_s20, %s789_s19 }
   0x7   : > { %p182_p2 = scmp.eq.s32.totalorder %s613_s24, 3  ;;  %p187_p3 = scmp.ne.s32.totalorder %s789_s19, %s785_s18 }
   0x8   : > { %s986_s26 = smov (%p32_p0, %s30_s26), 0  ;;  %p188_p5 = scmp.eq.s32.totalorder %s614_s25, 3 }
   0x9   : > { %p881_p4 = por %p182_p2, %p181_p1  ;;  %s166_s29 = ssub.s32 %s801_s22, %s986_s26 }
   0xa   : > { %p617_p6 = scmp.ge.s32.totalorder %s805_s23, 1  ;;  %p169_p7 = scmp.eq.s32.totalorder %s166_s29, 0 }
   0xb   : > { %p888_p8 = por %p188_p5, %p187_p3  ;;  %p244_p9 = scmp.lt.s32.totalorder %s805_s23, 5 }
   0xc   : > { %s894_s6 = scalar_select %p169_p7, %s793_s20, %s171_s27  }
   0xd   : > { %p245_p10 = pnand %p617_p6, %p244_p9 }
   0xe   : > { %p290_p11 = scmp.lt.s32.totalorder (!%p245_p10), %s797_s21, 3  ;;  %v807_v0 = vmov (!%p245_p10), 0.0|0.0   ;;  %vm808_vm0 = vmmov (!%p245_p10), 0   ;;  %v809_v1 = vmov (!%p245_p10), 0.0   ;;  %vm323_vm1 = vcmask (!%p245_p10), 130048   ;;  %s629_s14 = sshll.u32 (!%p245_p10), %s797_s21, 7 }
   0xf   : > { %248 = sbr.rel (%p245_p10) target bundleno = 476 (0x1dc), region = 40  ;;  %660 = vmatprep.subr.bf16.mxu0 (!%p245_p10), %v807_v0  ;;  %646 = vmatprep.mubr.msk.f32.mxu0 (!%p245_p10), %vm808_vm0, %v809_v1  ;;  %vm409_vm2 = vcmask (!%p245_p10), 261120   ;;  %vm483_vm3 = vcmask (!%p245_p10), 64512  }
  0x10   : > { %663 = vmatprep.subr.bf16.mxu1 (!%p245_p10), %v807_v0  ;;  %657 = vmatprep.mubr.msk.f32.mxu1 (!%p245_p10), %vm808_vm0, %v809_v1 }
  0x16   : > { %s898_s7 = scalar_select %p290_p11, %s797_s21, 3 }
  0x17   : > { %s810_s21 = smov [#allocation2]  }
  0x18   : > { %s632_s8 = sshll.u32 %s898_s7, 4  ;;  %s619_s9 = sshll.u32 %s898_s7, 3 }
  0x19   : > { %s301_s12 = scalar_lea.vmem %s973_s1, %s632_s8  ;;  %s296_s15 = scalar_lea.vmem %s972_s0, %s619_s9 }
  0x1a   : > { %v314_v2 = vld [vmem:[%s301_s12] sm:$0xff]  ;;  %v315_v3 = vld [vmem:[%s301_s12 + $0x8] sm:$0xff]  ;;  %s633_s16 = sshll.u32 %s898_s7, 5  ;;  %s304_s8 = scalar_lea.vmem %s974_s2, %s898_s7 }
  0x1b   : > { %v661_v4 = vpack.c.bf16 %v315_v3, %v314_v2  ;;  %s309_s25 = scalar_lea.vmem %s975_s3, %s633_s16  ;;  %v313_v7 = vld [vmem:[%s296_s15] sm:$0xff]  ;;  %s287_s9 = sand.u32 1, %s789_s19  }
  0x1c   : > { %v398_v5 = vld [vmem:[%s309_s25] sm:$0xff]  ;;  %v399_v6 = vld [vmem:[%s309_s25 + $0x8] sm:$0xff]  ;;  %v400_v9 = vld [vmem:[%s309_s25 + $0x10] sm:$0xff]  ;;  %s618_s10 = sshll.u32 %s287_s9, 3  ;;  %s312_s13 = scalar_lea.vmem %s976_s4, %s898_s7 }
  0x1d   : > { %662 = vmatpush3.bf16.msra.mxu0 %v661_v4  ;;  %v664_v8 = vpack.c.bf16 %v399_v6, %v398_v5  ;;  %v401_v10 = vld [vmem:[%s309_s25 + $0x18] sm:$0xff]  ;;  %v624_v12 = vld [vmem:[%s304_s8] ss:$0 sm:$0xff]  ;;  %s289_s15 = scalar_lea.vmem [#allocation2], %s618_s10  ;;  %s925_s25 = scalar_lea.hbm %s977_s5, %s629_s14 }
  0x1e   : > { %v667_v11 = vpack.c.bf16 %v401_v10, %v400_v9  ;;  %v626_v17 = vld [vmem:[%s312_s13] ss:$0 sm:$0xff]  ;;  %s500_s16 = sshll.u32 %s289_s15, 4  ;;  %s486_s7 = scalar_lea.sflag [#allocation3], %s287_s9  ;;  %s927_s16 = int_to_ptr.vmem [resolvable:$true] %s500_s16 }
  0x1f   : > { %665 = vmatpush3.bf16.msra.mxu1 %v664_v8  ;;  %s727_s27 = scalar_lea.vmem %s927_s16, 128  ;;  %s731_s29 = sshll.u32 %s810_s21, 4  ;;  %s732_s29 = int_to_ptr.vmem [resolvable:$false] %s731_s29 }
  0x20   : > { %647 = vmatmul.mubr.msk.f32.vlgmr.msra.gmra.mrb[0].mxu0 %vm323_vm1, %v313_v7  ;;  %666 = vmatprep.subr.bf16.mxu1 %v807_v0  ;;  %p728_p12 = scmp.ne.s32.totalorder %s927_s16, %s727_s27  ;;  %s733_s8 = scalar_lea.vmem %s732_s29, 256 }
  0x21   : > { %p734_p1 = scmp.lt.s32.totalorder %s927_s16, %s732_s29  ;;  %p735_p2 = scmp.lt.s32.totalorder %s733_s8, %s727_s27 }
  0x22   : > { %p729_p13 = pnand %p728_p12, %p881_p4 }
  0x23   : > { %668 = vmatpush3.bf16.msra.mxu1 %v667_v11  ;;  %p736_p3 = por %p735_p2, %p734_p1 }
  0x24   : > { %p730_p0 = pneg %p729_p13 }
  0x26   : > { %p737_p5 = pnand %p736_p3, %p730_p0 }
  0xf3   : > { %v393_v13 = vpop.f32.mrb[0].mxu0 }
  0xf4   : > { %v394_v14 = vadd.f32 %v624_v12, %v393_v13  ;;  %v648_v15 = vpop.f32.mrb[1].mxu0 }
  0xf6   : > { %v397_v16 = vmax.f32 %v394_v14, 0.0 }
  0xf8   : > { %658 = vmatmul.mubr.msk.f32.vlgmr.msra.gmra.mrb[0].mxu1 %vm409_vm2, %v397_v16 }
 0x1cb   : > { %v479_v18 = vpop.f32.mrb[0].mxu1 }
 0x1cc   : > { %v480_v19 = vadd.f32 %v626_v17, %v479_v18  ;;  %v659_v20 = vpop.f32.mrb[1].mxu1 }
 0x1ce   : > { %484 = vst.msk [vmem:[%s289_s15] sm:$0xff] %vm483_vm3, %v480_v19 }
 0x1cf   : > { %740 = shalt.err (!%p737_p5)
}
 0x1d0   : > { %s741_s9 = scalar_lea.hbm %s925_s25, 128  ;;  %s745_s12 = scalar_lea.hbm %s977_s5, 512 }
 0x1d1   : > { %p742_p6 = scmp.ne.s32.totalorder %s925_s25, %s741_s9  ;;  %p746_p10 = scmp.lt.u32.totalorder %s925_s25, %s977_s5 }
 0x1d2   : > { %p747_p11 = scmp.lt.u32.totalorder %s745_s12, %s741_s9  ;;  %p749_p13 = scmp.lt.u32.totalorder %s741_s9, %s925_s25 }
 0x1d3   : > { %p743_p7 = pnand %p742_p6, %p881_p4 }
 0x1d4   : > { %p748_p12 = por %p747_p11, %p746_p10 }
 0x1d5   : > { %p744_p9 = pneg %p743_p7 }
 0x1d6   : > { %p750_p0 = por %p749_p13, %p748_p12 }
 0x1d8   : > { %p751_p1 = pnand %p750_p0, %p744_p9 }
 0x1da   : > { %754 = shalt.err (!%p751_p1)
}
 0x1db   : > { %669 = dma.vmem_to_hbm [thread:$0]  (%p881_p4), %s927_s16, 128, %s925_s25, %s486_s7  }
 0x1dc PF: > { %p675_p2 = scmp.ge.s32.totalorder %s805_s23, 2  ;;  %s512_s15 = sand.u32 1, %s785_s18  }
 0x1dd   : > { %s513_s17 = scalar_lea.sflag [#allocation3], %s512_s15 }
 0x1de   : > { %p672_p3 = pnand %p675_p2, %p888_p8 }
 0x1e0   : > { %780 = dma.done.wait (!%p672_p3), %s513_s17, 128  }
 0x1e1   : > { %782 = vsyncadd (!%p672_p3), %s513_s17, 4294967168  ;;  %s18_s23 = sadd.s32 1, %s805_s23   ;;  %s980_s18 = smov %s789_s19 }
 0x1e2   : > { %p15_p5 = scmp.ge.s32.totalorder %s18_s23, 6   ;;  %s981_s19 = smov %s793_s20 }
 0x1e3   : > { %s982_s20 = smov %s894_s6  ;;  %s983_s21 = smov %s801_s22 }
 0x1e4   : > { %s984_s22 = smov %s986_s26  ;;  %17 = sbr.rel (!%p15_p5) target bundleno = 4 (0x4), region = 87 }
 0x1eb   :  { %518 = vsyncpa [#allocation3], 1 }
 0x1ec   :  { %520 = vsyncpa [#allocation3 + $0x1], 1 }

</bundles_post_ra>
